<compile_context>
chip_gen: v6e
topology: v6e:2x2x1
jax: 0.10.0
libtpu: 0.0.40
codegen_flags: <defaults>
</compile_context>

<pallas_src>
import jax
import jax.numpy as jnp
from jax import lax
from jax.experimental import pallas as pl
from jax.experimental.pallas import tpu as pltpu


def _round_up(x, m):
    return ((x + m - 1) // m) * m


def _tensorcores_per_device():
    """Best-effort TC-per-device count; defaults to 1 (no batch split)."""
    try:
        dev = jax.devices()[0]
    except Exception:
        return 1
    for attr in ("num_cores", "core_count"):
        v = getattr(dev, attr, None)
        if isinstance(v, int) and v >= 1:
            return v
    return 1


def _vmem_capacity_bytes():
    try:
        cap = int(getattr(pltpu.get_tpu_info(), "vmem_capacity_bytes", 0))
        if cap > 0:
            return cap
    except Exception:
        pass
    return 64 * 1024 * 1024  # conservative (v7x-sized) default


def _make_lstm_kernel(T, Tc, Bt, Ip, H, G):
    """LSTM recurrence + fc head, closed over static sizes."""
    f32 = jnp.float32

    def kernel(x_ref,      # (Tc, Bt, Ip) f32 : raw inputs for this chunk
               wih_ref,    # (Ip, G)      f32 : W_ih^T, packed-gate layout
               b_ref,      # (1, G)       f32 : b_ih + b_hh, packed
               whh_ref,    # (H, G)       bf16: W_hh^T, packed-gate layout
               wfc_ref,    # (1, H)       f32 : fc.weight
               bfc_ref,    # (1,)         f32 : fc.bias (SMEM)
               out_ref,    # (Bt, 1)      f32
               gx_scr,     # VMEM (Tc, Bt, G) f32 : per-chunk gate preacts
               h_scr,      # VMEM (Bt, H) f32 : hidden state across chunks
               c_scr):     # VMEM (Bt, H) f32 : cell state across chunks
        t_chunk = pl.program_id(1)

        # ---- chunk-level input projection (one matmul, off the serial chain)
        xb = x_ref[...].reshape(Tc * Bt, Ip)
        proj = jnp.dot(xb, wih_ref[...], preferred_element_type=f32)
        gx_scr[...] = (proj + b_ref[...]).reshape(Tc, Bt, G)

        @pl.when(t_chunk == 0)
        def _():
            h_scr[...] = jnp.zeros_like(h_scr)
            c_scr[...] = jnp.zeros_like(c_scr)

        whh = whh_ref[...]  # hoisted: (H, G) bf16 stays vreg/VMEM resident

        def step(t, carry):
            h, c = carry  # register-carried (Bt, H) f32 state
            # TODO(synk): consider latching W_hh in the MXU via
            # pltpu.matmul_push_rhs/matmul_acc_lhs once a bundle dump confirms
            # per-step RHS re-pushes on the serial chain.
            gates = gx_scr[t] + jnp.dot(h.astype(jnp.bfloat16), whh,
                                        preferred_element_type=f32)  # (Bt, G)
            # One full-width sigmoid + one full-width tanh (EUP), then cheap
            # lane slices per gate.  Packed layout: [i | f | g | o] * H lanes.
            sig = jax.nn.sigmoid(gates)
            th = jnp.tanh(gates)
            i_g = sig[:, 0 * H:1 * H]
            f_g = sig[:, 1 * H:2 * H]
            g_g = th[:, 2 * H:3 * H]
            o_g = sig[:, 3 * H:4 * H]
            c_new = f_g * c + i_g * g_g
            h_new = o_g * jnp.tanh(c_new)
            if T % Tc != 0:
                # Last chunk may contain zero-padded timesteps: keep old state.
                valid = t_chunk * Tc + t < T
                h_new = jnp.where(valid, h_new, h)
                c_new = jnp.where(valid, c_new, c)
            return h_new, c_new

        h_fin, c_fin = lax.fori_loop(
            0, Tc, step, (h_scr[...], c_scr[...]),
            unroll=True if Tc <= 16 else 8)

        # Write state back once per chunk (not once per step).
        h_scr[...] = h_fin
        c_scr[...] = c_fin

        @pl.when(t_chunk == pl.num_programs(1) - 1)
        def _():
            # nn.Dropout(0.32) is identity in eval mode.
            # TODO(synk): train-mode stochastic dropout is not implemented.
            out_ref[...] = (jnp.sum(h_fin * wfc_ref[...], axis=-1,
                                    keepdims=True) + bfc_ref[0])

    return kernel


def discriminator_forward(x, params, *, time_chunk=None):
    """x: (batch, seq_len, input_size) float32 -> (batch, 1) float32."""
    B, T, I = x.shape
    H = params["w_hh"].shape[1]
    f32 = jnp.float32

    Ip = _round_up(max(I, 1), 8)       # sublane-friendly input width
    G = _round_up(4 * H, 128)          # packed gate lanes [i|f|g|o], 0-padded
    # NOTE: packed layout is correct for any H and optimal for H << 128 (the
    # regime this module uses); for very large H a per-gate-padded layout
    # would reduce the recurrent matmul width again.

    # ---- batch blocking (split only when the device really has >= 2 TCs) --
    if _tensorcores_per_device() >= 2 and B >= 16:
        Bp = _round_up(B, 16)
        Bt = Bp // 2
    else:
        Bp = _round_up(B, 8)
        Bt = Bp
    n_b = Bp // Bt

    # ---- weights: packed-gate layout (PyTorch gate order i, f, g, o) -------
    w_ih = jnp.pad(params["w_ih"].astype(f32),
                   ((0, G - 4 * H), (0, Ip - I)))         # (G, Ip)
    wih_t = w_ih.T                                        # (Ip, G)

    w_hh = jnp.pad(params["w_hh"].astype(f32), ((0, G - 4 * H), (0, 0)))
    whh_t = w_hh.T.astype(jnp.bfloat16)                   # (H, G) bf16
    # TODO(synk): bf16 W_hh / bf16 h cast trades a little accuracy for MXU
    # throughput on the serial chain; re-validate vs f32 for very long T.

    b_gate = (params["b_ih"] + params["b_hh"]).astype(f32)
    b_gate = jnp.pad(b_gate, (0, G - 4 * H)).reshape(1, G)

    wfc = params["w_fc"].astype(f32).reshape(1, H)
    bfc = params["b_fc"].astype(f32).reshape(1)

    # ---- time chunking: generation-aware VMEM budget, computed from Bt -----
    if time_chunk is None:
        cap = _vmem_capacity_bytes()
        budget = max(2 << 20, min(20 << 20, cap // 5))
        per_step = Bt * (G * 4 + 2 * Ip * 4)   # gx scratch + double-buffered x
        time_chunk = max(1, min(T, budget // per_step, 512))
    Tc = int(time_chunk)
    n_t = -(-T // Tc)
    T_pad = n_t * Tc

    # ---- input: time-major, zero-padded (tiny: only T*B*Ip*4 bytes) --------
    x_tm = jnp.transpose(x.astype(f32), (1, 0, 2))        # (T, B, I)
    x_tm = jnp.pad(x_tm, ((0, T_pad - T), (0, Bp - B), (0, Ip - I)))

    kernel = _make_lstm_kernel(T, Tc, Bt, Ip, H, G)

    vmem_limit = int(min(96 * 1024 * 1024,
                         max(32 * 1024 * 1024, _vmem_capacity_bytes() * 3 // 5)))

    out = pl.pallas_call(
        kernel,
        out_shape=jax.ShapeDtypeStruct((Bp, 1), f32),
        grid_spec=pltpu.PrefetchScalarGridSpec(
            num_scalar_prefetch=0,
            grid=(n_b, n_t),
            in_specs=[
                pl.BlockSpec((Tc, Bt, Ip), lambda bb, tt: (tt, bb, 0)),
                pl.BlockSpec((Ip, G), lambda bb, tt: (0, 0)),
                pl.BlockSpec((1, G), lambda bb, tt: (0, 0)),
                pl.BlockSpec((H, G), lambda bb, tt: (0, 0)),
                pl.BlockSpec((1, H), lambda bb, tt: (0, 0)),
                pl.BlockSpec(memory_space=pltpu.MemorySpace.SMEM),
            ],
            out_specs=pl.BlockSpec((Bt, 1), lambda bb, tt: (bb, 0)),
            scratch_shapes=[
                pltpu.VMEM((Tc, Bt, G), f32),   # per-chunk gate preactivations
                pltpu.VMEM((Bt, H), f32),       # h state (persists over chunks)
                pltpu.VMEM((Bt, H), f32),       # c state
            ],
        ),
        compiler_params=pltpu.CompilerParams(
            dimension_semantics=("parallel", "arbitrary"),
            vmem_limit_bytes=vmem_limit),
    )(x_tm, wih_t, b_gate, whh_t, wfc, bfc)

    return out[:B]


def _reference_forward(x, params):
    """Pure-JAX f32 reference matching PyTorch LSTM + Linear semantics."""
    B, T, I = x.shape
    H = params["w_hh"].shape[1]
    h = jnp.zeros((B, H), jnp.float32)
    c = jnp.zeros((B, H), jnp.float32)
    w_ih_t = params["w_ih"].T
    w_hh_t = params["w_hh"].T
    b = params["b_ih"] + params["b_hh"]
    for t in range(T):
        gates = x[:, t, :] @ w_ih_t + h @ w_hh_t + b
        i_g = jax.nn.sigmoid(gates[:, 0 * H:1 * H])
        f_g = jax.nn.sigmoid(gates[:, 1 * H:2 * H])
        g_g = jnp.tanh(gates[:, 2 * H:3 * H])
        o_g = jax.nn.sigmoid(gates[:, 3 * H:4 * H])
        c = f_g * c + i_g * g_g
        h = o_g * jnp.tanh(c)
    return h @ params["w_fc"].T + params["b_fc"]


def init_params(key, input_size, hidden_size):
    """Deterministic synthetic parameters with PyTorch LSTM/Linear shapes."""
    k = jax.random.split(key, 6)
    s = 0.1
    return {
        "w_ih": s * jax.random.normal(k[0], (4 * hidden_size, input_size), jnp.float32),
        "w_hh": s * jax.random.normal(k[1], (4 * hidden_size, hidden_size), jnp.float32),
        "b_ih": s * jax.random.normal(k[2], (4 * hidden_size,), jnp.float32),
        "b_hh": s * jax.random.normal(k[3], (4 * hidden_size,), jnp.float32),
        "w_fc": s * jax.random.normal(k[4], (1, hidden_size), jnp.float32),
        "b_fc": s * jax.random.normal(k[5], (1,), jnp.float32),
    }


if __name__ == "__main__":
    batch, seq_len, input_size, hidden_size = 2, 8, 4, 32

    key = jax.random.PRNGKey(0)
    kx, kp = jax.random.split(key)
    x = jax.random.normal(kx, (batch, seq_len, input_size), jnp.float32)
    params = init_params(kp, input_size, hidden_size)

    out = discriminator_forward(x, params)
    jax.block_until_ready(out)
    assert out.shape == (batch, 1), out.shape

    ref = _reference_forward(x, params)
    max_err = float(jnp.max(jnp.abs(out - ref)))
    assert max_err < 5e-2, f"max abs error vs reference: {max_err}"

    print("KERNEL_OK")
</pallas_src>

<mosaic_0001>
module attributes {stable_mosaic.version = 11 : i64} {
  func.func @kernel(%arg0: i32, %arg1: i32, %arg2: memref<8x8x8xf32, #tpu.memory_space<vmem>>, %arg3: memref<8x128xf32, #tpu.memory_space<vmem>>, %arg4: memref<1x128xf32, #tpu.memory_space<vmem>>, %arg5: memref<32x128xbf16, #tpu.memory_space<vmem>>, %arg6: memref<1x32xf32, #tpu.memory_space<vmem>>, %arg7: memref<1xf32, #tpu.memory_space<smem>>, %arg8: memref<8x1xf32, #tpu.memory_space<vmem>>, %arg9: memref<8x8x128xf32, #tpu.memory_space<vmem>>, %arg10: memref<8x32xf32, #tpu.memory_space<vmem>>, %arg11: memref<8x32xf32, #tpu.memory_space<vmem>>) attributes {dimension_semantics = [#tpu.dimension_semantics<parallel>, #tpu.dimension_semantics<arbitrary>], iteration_bounds = array<i64: 1, 1>, scalar_prefetch = 0 : i64, scratch_operands = 3 : i64, tpu.core_type = #tpu.core_type<tc>, window_params = [{transform_indices = @transform_0, window_bounds = array<i64: 8, 8, 8>}, {pipeline_mode = #tpu.pipeline_mode<synchronous>, transform_indices = @transform_1, window_bounds = array<i64: 8, 128>}, {pipeline_mode = #tpu.pipeline_mode<synchronous>, transform_indices = @transform_2, window_bounds = array<i64: 1, 128>}, {pipeline_mode = #tpu.pipeline_mode<synchronous>, transform_indices = @transform_3, window_bounds = array<i64: 32, 128>}, {pipeline_mode = #tpu.pipeline_mode<synchronous>, transform_indices = @transform_4, window_bounds = array<i64: 1, 32>}, {transform_indices = @transform_5, window_bounds = array<i64: 1>}, {transform_indices = @transform_6, window_bounds = array<i64: 8, 1>}]} {
    %c0 = arith.constant 0 : index
    %c0_0 = arith.constant 0 : index
    %c0_1 = arith.constant 0 : index
    %0 = vector.load %arg2[%c0, %c0_0, %c0_1] : memref<8x8x8xf32, #tpu.memory_space<vmem>>, vector<8x8x8xf32>
    %1 = vector.shape_cast %0 : vector<8x8x8xf32> to vector<64x8xf32>
    %c0_2 = arith.constant 0 : index
    %c0_3 = arith.constant 0 : index
    %2 = vector.load %arg3[%c0_2, %c0_3] : memref<8x128xf32, #tpu.memory_space<vmem>>, vector<8x128xf32>
    %cst = arith.constant dense<0.000000e+00> : vector<64x128xf32>
    %3 = tpu.matmul %1, %2, %cst {dimension_numbers = #tpu.dot_dimension_numbers<[1], [0], [0], [1], [0, 0, 1, 1], [], []>} : vector<64x8xf32>, vector<8x128xf32>, vector<64x128xf32> -> vector<64x128xf32>
    %c0_4 = arith.constant 0 : index
    %c0_5 = arith.constant 0 : index
    %4 = vector.load %arg4[%c0_4, %c0_5] : memref<1x128xf32, #tpu.memory_space<vmem>>, vector<1x128xf32>
    %5 = vector.broadcast %4 : vector<1x128xf32> to vector<64x128xf32>
    %6 = arith.addf %3, %5 : vector<64x128xf32>
    %7 = vector.shape_cast %6 : vector<64x128xf32> to vector<8x8x128xf32>
    %c0_6 = arith.constant 0 : index
    %c0_7 = arith.constant 0 : index
    %c0_8 = arith.constant 0 : index
    %8 = vector.load %arg9[%c0_6, %c0_7, %c0_8] : memref<8x8x128xf32, #tpu.memory_space<vmem>>, vector<8x8x128xf32>
    tpu.vector_store %arg9[%c0_6, %c0_7, %c0_8], %7 {strides = array<i32>} : memref<8x8x128xf32, #tpu.memory_space<vmem>>, vector<8x8x128xf32>,
    %c0_i32 = arith.constant 0 : i32
    %9 = arith.cmpi eq, %arg1, %c0_i32 : i32
    %10 = arith.extui %9 : i1 to i32
    %c0_i32_9 = arith.constant 0 : i32
    %11 = arith.cmpi ne, %10, %c0_i32_9 : i32
    scf.if %11 {
      %cst_55 = arith.constant 0.000000e+00 : f32
      %188 = vector.broadcast %cst_55 : f32 to vector<8x32xf32>
      %c0_56 = arith.constant 0 : index
      %c0_57 = arith.constant 0 : index
      %189 = vector.load %arg10[%c0_56, %c0_57] : memref<8x32xf32, #tpu.memory_space<vmem>>, vector<8x32xf32>
      tpu.vector_store %arg10[%c0_56, %c0_57], %188 {strides = array<i32>} : memref<8x32xf32, #tpu.memory_space<vmem>>, vector<8x32xf32>,
      %cst_58 = arith.constant 0.000000e+00 : f32
      %190 = vector.broadcast %cst_58 : f32 to vector<8x32xf32>
      %c0_59 = arith.constant 0 : index
      %c0_60 = arith.constant 0 : index
      %191 = vector.load %arg11[%c0_59, %c0_60] : memref<8x32xf32, #tpu.memory_space<vmem>>, vector<8x32xf32>
      tpu.vector_store %arg11[%c0_59, %c0_60], %190 {strides = array<i32>} : memref<8x32xf32, #tpu.memory_space<vmem>>, vector<8x32xf32>,
    } else {
    }
    %c0_10 = arith.constant 0 : index
    %c0_11 = arith.constant 0 : index
    %12 = vector.load %arg5[%c0_10, %c0_11] : memref<32x128xbf16, #tpu.memory_space<vmem>>, vector<32x128xbf16>
    %c0_12 = arith.constant 0 : index
    %c0_13 = arith.constant 0 : index
    %13 = vector.load %arg10[%c0_12, %c0_13] : memref<8x32xf32, #tpu.memory_space<vmem>>, vector<8x32xf32>
    %c0_14 = arith.constant 0 : index
    %c0_15 = arith.constant 0 : index
    %14 = vector.load %arg11[%c0_14, %c0_15] : memref<8x32xf32, #tpu.memory_space<vmem>>, vector<8x32xf32>
    %c0_i32_16 = arith.constant 0 : i32
    %15 = arith.index_cast %c0_i32_16 : i32 to index
    %c0_17 = arith.constant 0 : index
    %c0_18 = arith.constant 0 : index
    %16 = vector.load %arg9[%15, %c0_17, %c0_18] : memref<8x8x128xf32, #tpu.memory_space<vmem>>, vector<1x8x128xf32>
    %17 = vector.shape_cast %16 : vector<1x8x128xf32> to vector<8x128xf32>
    %18 = arith.truncf %13 : vector<8x32xf32> to vector<8x32xbf16>
    %cst_19 = arith.constant dense<0.000000e+00> : vector<8x128xf32>
    %19 = tpu.matmul %18, %12, %cst_19 {dimension_numbers = #tpu.dot_dimension_numbers<[1], [0], [0], [1], [0, 0, 1, 1], [], []>} : vector<8x32xbf16>, vector<32x128xbf16>, vector<8x128xf32> -> vector<8x128xf32>
    %20 = arith.addf %17, %19 : vector<8x128xf32>
    %21 = arith.negf %20 : vector<8x128xf32>
    %22 = math.exp %21 : vector<8x128xf32>
    %cst_20 = arith.constant 1.000000e+00 : f32
    %23 = vector.broadcast %cst_20 : f32 to vector<8x128xf32>
    %24 = arith.addf %23, %22 : vector<8x128xf32>
    %25 = arith.divf %23, %24 : vector<8x128xf32>
    %26 = math.tanh %20 : vector<8x128xf32>
    %27 = vector.extract_strided_slice %25 {offsets = [0, 0], sizes = [8, 32], strides = [1, 1]} : vector<8x128xf32> to vector<8x32xf32>
    %28 = vector.extract_strided_slice %25 {offsets = [0, 32], sizes = [8, 32], strides = [1, 1]} : vector<8x128xf32> to vector<8x32xf32>
    %29 = vector.extract_strided_slice %26 {offsets = [0, 64], sizes = [8, 32], strides = [1, 1]} : vector<8x128xf32> to vector<8x32xf32>
    %30 = vector.extract_strided_slice %25 {offsets = [0, 96], sizes = [8, 32], strides = [1, 1]} : vector<8x128xf32> to vector<8x32xf32>
    %31 = arith.mulf %28, %14 : vector<8x32xf32>
    %32 = arith.mulf %27, %29 : vector<8x32xf32>
    %33 = arith.addf %31, %32 : vector<8x32xf32>
    %34 = math.tanh %33 : vector<8x32xf32>
    %35 = arith.mulf %30, %34 : vector<8x32xf32>
    %c1_i32 = arith.constant 1 : i32
    %36 = arith.index_cast %c1_i32 : i32 to index
    %c0_21 = arith.constant 0 : index
    %c0_22 = arith.constant 0 : index
    %37 = vector.load %arg9[%36, %c0_21, %c0_22] : memref<8x8x128xf32, #tpu.memory_space<vmem>>, vector<1x8x128xf32>
    %38 = vector.shape_cast %37 : vector<1x8x128xf32> to vector<8x128xf32>
    %39 = arith.truncf %35 : vector<8x32xf32> to vector<8x32xbf16>
    %cst_23 = arith.constant dense<0.000000e+00> : vector<8x128xf32>
    %40 = tpu.matmul %39, %12, %cst_23 {dimension_numbers = #tpu.dot_dimension_numbers<[1], [0], [0], [1], [0, 0, 1, 1], [], []>} : vector<8x32xbf16>, vector<32x128xbf16>, vector<8x128xf32> -> vector<8x128xf32>
    %41 = arith.addf %38, %40 : vector<8x128xf32>
    %42 = arith.negf %41 : vector<8x128xf32>
    %43 = math.exp %42 : vector<8x128xf32>
    %cst_24 = arith.constant 1.000000e+00 : f32
    %44 = vector.broadcast %cst_24 : f32 to vector<8x128xf32>
    %45 = arith.addf %44, %43 : vector<8x128xf32>
    %46 = arith.divf %44, %45 : vector<8x128xf32>
    %47 = math.tanh %41 : vector<8x128xf32>
    %48 = vector.extract_strided_slice %46 {offsets = [0, 0], sizes = [8, 32], strides = [1, 1]} : vector<8x128xf32> to vector<8x32xf32>
    %49 = vector.extract_strided_slice %46 {offsets = [0, 32], sizes = [8, 32], strides = [1, 1]} : vector<8x128xf32> to vector<8x32xf32>
    %50 = vector.extract_strided_slice %47 {offsets = [0, 64], sizes = [8, 32], strides = [1, 1]} : vector<8x128xf32> to vector<8x32xf32>
    %51 = vector.extract_strided_slice %46 {offsets = [0, 96], sizes = [8, 32], strides = [1, 1]} : vector<8x128xf32> to vector<8x32xf32>
    %52 = arith.mulf %49, %33 : vector<8x32xf32>
    %53 = arith.mulf %48, %50 : vector<8x32xf32>
    %54 = arith.addf %52, %53 : vector<8x32xf32>
    %55 = math.tanh %54 : vector<8x32xf32>
    %56 = arith.mulf %51, %55 : vector<8x32xf32>
    %c2_i32 = arith.constant 2 : i32
    %57 = arith.index_cast %c2_i32 : i32 to index
    %c0_25 = arith.constant 0 : index
    %c0_26 = arith.constant 0 : index
    %58 = vector.load %arg9[%57, %c0_25, %c0_26] : memref<8x8x128xf32, #tpu.memory_space<vmem>>, vector<1x8x128xf32>
    %59 = vector.shape_cast %58 : vector<1x8x128xf32> to vector<8x128xf32>
    %60 = arith.truncf %56 : vector<8x32xf32> to vector<8x32xbf16>
    %cst_27 = arith.constant dense<0.000000e+00> : vector<8x128xf32>
    %61 = tpu.matmul %60, %12, %cst_27 {dimension_numbers = #tpu.dot_dimension_numbers<[1], [0], [0], [1], [0, 0, 1, 1], [], []>} : vector<8x32xbf16>, vector<32x128xbf16>, vector<8x128xf32> -> vector<8x128xf32>
    %62 = arith.addf %59, %61 : vector<8x128xf32>
    %63 = arith.negf %62 : vector<8x128xf32>
    %64 = math.exp %63 : vector<8x128xf32>
    %cst_28 = arith.constant 1.000000e+00 : f32
    %65 = vector.broadcast %cst_28 : f32 to vector<8x128xf32>
    %66 = arith.addf %65, %64 : vector<8x128xf32>
    %67 = arith.divf %65, %66 : vector<8x128xf32>
    %68 = math.tanh %62 : vector<8x128xf32>
    %69 = vector.extract_strided_slice %67 {offsets = [0, 0], sizes = [8, 32], strides = [1, 1]} : vector<8x128xf32> to vector<8x32xf32>
    %70 = vector.extract_strided_slice %67 {offsets = [0, 32], sizes = [8, 32], strides = [1, 1]} : vector<8x128xf32> to vector<8x32xf32>
    %71 = vector.extract_strided_slice %68 {offsets = [0, 64], sizes = [8, 32], strides = [1, 1]} : vector<8x128xf32> to vector<8x32xf32>
    %72 = vector.extract_strided_slice %67 {offsets = [0, 96], sizes = [8, 32], strides = [1, 1]} : vector<8x128xf32> to vector<8x32xf32>
    %73 = arith.mulf %70, %54 : vector<8x32xf32>
    %74 = arith.mulf %69, %71 : vector<8x32xf32>
    %75 = arith.addf %73, %74 : vector<8x32xf32>
    %76 = math.tanh %75 : vector<8x32xf32>
    %77 = arith.mulf %72, %76 : vector<8x32xf32>
    %c3_i32 = arith.constant 3 : i32
    %78 = arith.index_cast %c3_i32 : i32 to index
    %c0_29 = arith.constant 0 : index
    %c0_30 = arith.constant 0 : index
    %79 = vector.load %arg9[%78, %c0_29, %c0_30] : memref<8x8x128xf32, #tpu.memory_space<vmem>>, vector<1x8x128xf32>
    %80 = vector.shape_cast %79 : vector<1x8x128xf32> to vector<8x128xf32>
    %81 = arith.truncf %77 : vector<8x32xf32> to vector<8x32xbf16>
    %cst_31 = arith.constant dense<0.000000e+00> : vector<8x128xf32>
    %82 = tpu.matmul %81, %12, %cst_31 {dimension_numbers = #tpu.dot_dimension_numbers<[1], [0], [0], [1], [0, 0, 1, 1], [], []>} : vector<8x32xbf16>, vector<32x128xbf16>, vector<8x128xf32> -> vector<8x128xf32>
    %83 = arith.addf %80, %82 : vector<8x128xf32>
    %84 = arith.negf %83 : vector<8x128xf32>
    %85 = math.exp %84 : vector<8x128xf32>
    %cst_32 = arith.constant 1.000000e+00 : f32
    %86 = vector.broadcast %cst_32 : f32 to vector<8x128xf32>
    %87 = arith.addf %86, %85 : vector<8x128xf32>
    %88 = arith.divf %86, %87 : vector<8x128xf32>
    %89 = math.tanh %83 : vector<8x128xf32>
    %90 = vector.extract_strided_slice %88 {offsets = [0, 0], sizes = [8, 32], strides = [1, 1]} : vector<8x128xf32> to vector<8x32xf32>
    %91 = vector.extract_strided_slice %88 {offsets = [0, 32], sizes = [8, 32], strides = [1, 1]} : vector<8x128xf32> to vector<8x32xf32>
    %92 = vector.extract_strided_slice %89 {offsets = [0, 64], sizes = [8, 32], strides = [1, 1]} : vector<8x128xf32> to vector<8x32xf32>
    %93 = vector.extract_strided_slice %88 {offsets = [0, 96], sizes = [8, 32], strides = [1, 1]} : vector<8x128xf32> to vector<8x32xf32>
    %94 = arith.mulf %91, %75 : vector<8x32xf32>
    %95 = arith.mulf %90, %92 : vector<8x32xf32>
    %96 = arith.addf %94, %95 : vector<8x32xf32>
    %97 = math.tanh %96 : vector<8x32xf32>
    %98 = arith.mulf %93, %97 : vector<8x32xf32>
    %c4_i32 = arith.constant 4 : i32
    %99 = arith.index_cast %c4_i32 : i32 to index
    %c0_33 = arith.constant 0 : index
    %c0_34 = arith.constant 0 : index
    %100 = vector.load %arg9[%99, %c0_33, %c0_34] : memref<8x8x128xf32, #tpu.memory_space<vmem>>, vector<1x8x128xf32>
    %101 = vector.shape_cast %100 : vector<1x8x128xf32> to vector<8x128xf32>
    %102 = arith.truncf %98 : vector<8x32xf32> to vector<8x32xbf16>
    %cst_35 = arith.constant dense<0.000000e+00> : vector<8x128xf32>
    %103 = tpu.matmul %102, %12, %cst_35 {dimension_numbers = #tpu.dot_dimension_numbers<[1], [0], [0], [1], [0, 0, 1, 1], [], []>} : vector<8x32xbf16>, vector<32x128xbf16>, vector<8x128xf32> -> vector<8x128xf32>
    %104 = arith.addf %101, %103 : vector<8x128xf32>
    %105 = arith.negf %104 : vector<8x128xf32>
    %106 = math.exp %105 : vector<8x128xf32>
    %cst_36 = arith.constant 1.000000e+00 : f32
    %107 = vector.broadcast %cst_36 : f32 to vector<8x128xf32>
    %108 = arith.addf %107, %106 : vector<8x128xf32>
    %109 = arith.divf %107, %108 : vector<8x128xf32>
    %110 = math.tanh %104 : vector<8x128xf32>
    %111 = vector.extract_strided_slice %109 {offsets = [0, 0], sizes = [8, 32], strides = [1, 1]} : vector<8x128xf32> to vector<8x32xf32>
    %112 = vector.extract_strided_slice %109 {offsets = [0, 32], sizes = [8, 32], strides = [1, 1]} : vector<8x128xf32> to vector<8x32xf32>
    %113 = vector.extract_strided_slice %110 {offsets = [0, 64], sizes = [8, 32], strides = [1, 1]} : vector<8x128xf32> to vector<8x32xf32>
    %114 = vector.extract_strided_slice %109 {offsets = [0, 96], sizes = [8, 32], strides = [1, 1]} : vector<8x128xf32> to vector<8x32xf32>
    %115 = arith.mulf %112, %96 : vector<8x32xf32>
    %116 = arith.mulf %111, %113 : vector<8x32xf32>
    %117 = arith.addf %115, %116 : vector<8x32xf32>
    %118 = math.tanh %117 : vector<8x32xf32>
    %119 = arith.mulf %114, %118 : vector<8x32xf32>
    %c5_i32 = arith.constant 5 : i32
    %120 = arith.index_cast %c5_i32 : i32 to index
    %c0_37 = arith.constant 0 : index
    %c0_38 = arith.constant 0 : index
    %121 = vector.load %arg9[%120, %c0_37, %c0_38] : memref<8x8x128xf32, #tpu.memory_space<vmem>>, vector<1x8x128xf32>
    %122 = vector.shape_cast %121 : vector<1x8x128xf32> to vector<8x128xf32>
    %123 = arith.truncf %119 : vector<8x32xf32> to vector<8x32xbf16>
    %cst_39 = arith.constant dense<0.000000e+00> : vector<8x128xf32>
    %124 = tpu.matmul %123, %12, %cst_39 {dimension_numbers = #tpu.dot_dimension_numbers<[1], [0], [0], [1], [0, 0, 1, 1], [], []>} : vector<8x32xbf16>, vector<32x128xbf16>, vector<8x128xf32> -> vector<8x128xf32>
    %125 = arith.addf %122, %124 : vector<8x128xf32>
    %126 = arith.negf %125 : vector<8x128xf32>
    %127 = math.exp %126 : vector<8x128xf32>
    %cst_40 = arith.constant 1.000000e+00 : f32
    %128 = vector.broadcast %cst_40 : f32 to vector<8x128xf32>
    %129 = arith.addf %128, %127 : vector<8x128xf32>
    %130 = arith.divf %128, %129 : vector<8x128xf32>
    %131 = math.tanh %125 : vector<8x128xf32>
    %132 = vector.extract_strided_slice %130 {offsets = [0, 0], sizes = [8, 32], strides = [1, 1]} : vector<8x128xf32> to vector<8x32xf32>
    %133 = vector.extract_strided_slice %130 {offsets = [0, 32], sizes = [8, 32], strides = [1, 1]} : vector<8x128xf32> to vector<8x32xf32>
    %134 = vector.extract_strided_slice %131 {offsets = [0, 64], sizes = [8, 32], strides = [1, 1]} : vector<8x128xf32> to vector<8x32xf32>
    %135 = vector.extract_strided_slice %130 {offsets = [0, 96], sizes = [8, 32], strides = [1, 1]} : vector<8x128xf32> to vector<8x32xf32>
    %136 = arith.mulf %133, %117 : vector<8x32xf32>
    %137 = arith.mulf %132, %134 : vector<8x32xf32>
    %138 = arith.addf %136, %137 : vector<8x32xf32>
    %139 = math.tanh %138 : vector<8x32xf32>
    %140 = arith.mulf %135, %139 : vector<8x32xf32>
    %c6_i32 = arith.constant 6 : i32
    %141 = arith.index_cast %c6_i32 : i32 to index
    %c0_41 = arith.constant 0 : index
    %c0_42 = arith.constant 0 : index
    %142 = vector.load %arg9[%141, %c0_41, %c0_42] : memref<8x8x128xf32, #tpu.memory_space<vmem>>, vector<1x8x128xf32>
    %143 = vector.shape_cast %142 : vector<1x8x128xf32> to vector<8x128xf32>
    %144 = arith.truncf %140 : vector<8x32xf32> to vector<8x32xbf16>
    %cst_43 = arith.constant dense<0.000000e+00> : vector<8x128xf32>
    %145 = tpu.matmul %144, %12, %cst_43 {dimension_numbers = #tpu.dot_dimension_numbers<[1], [0], [0], [1], [0, 0, 1, 1], [], []>} : vector<8x32xbf16>, vector<32x128xbf16>, vector<8x128xf32> -> vector<8x128xf32>
    %146 = arith.addf %143, %145 : vector<8x128xf32>
    %147 = arith.negf %146 : vector<8x128xf32>
    %148 = math.exp %147 : vector<8x128xf32>
    %cst_44 = arith.constant 1.000000e+00 : f32
    %149 = vector.broadcast %cst_44 : f32 to vector<8x128xf32>
    %150 = arith.addf %149, %148 : vector<8x128xf32>
    %151 = arith.divf %149, %150 : vector<8x128xf32>
    %152 = math.tanh %146 : vector<8x128xf32>
    %153 = vector.extract_strided_slice %151 {offsets = [0, 0], sizes = [8, 32], strides = [1, 1]} : vector<8x128xf32> to vector<8x32xf32>
    %154 = vector.extract_strided_slice %151 {offsets = [0, 32], sizes = [8, 32], strides = [1, 1]} : vector<8x128xf32> to vector<8x32xf32>
    %155 = vector.extract_strided_slice %152 {offsets = [0, 64], sizes = [8, 32], strides = [1, 1]} : vector<8x128xf32> to vector<8x32xf32>
    %156 = vector.extract_strided_slice %151 {offsets = [0, 96], sizes = [8, 32], strides = [1, 1]} : vector<8x128xf32> to vector<8x32xf32>
    %157 = arith.mulf %154, %138 : vector<8x32xf32>
    %158 = arith.mulf %153, %155 : vector<8x32xf32>
    %159 = arith.addf %157, %158 : vector<8x32xf32>
    %160 = math.tanh %159 : vector<8x32xf32>
    %161 = arith.mulf %156, %160 : vector<8x32xf32>
    %c7_i32 = arith.constant 7 : i32
    %162 = arith.index_cast %c7_i32 : i32 to index
    %c0_45 = arith.constant 0 : index
    %c0_46 = arith.constant 0 : index
    %163 = vector.load %arg9[%162, %c0_45, %c0_46] : memref<8x8x128xf32, #tpu.memory_space<vmem>>, vector<1x8x128xf32>
    %164 = vector.shape_cast %163 : vector<1x8x128xf32> to vector<8x128xf32>
    %165 = arith.truncf %161 : vector<8x32xf32> to vector<8x32xbf16>
    %cst_47 = arith.constant dense<0.000000e+00> : vector<8x128xf32>
    %166 = tpu.matmul %165, %12, %cst_47 {dimension_numbers = #tpu.dot_dimension_numbers<[1], [0], [0], [1], [0, 0, 1, 1], [], []>} : vector<8x32xbf16>, vector<32x128xbf16>, vector<8x128xf32> -> vector<8x128xf32>
    %167 = arith.addf %164, %166 : vector<8x128xf32>
    %168 = arith.negf %167 : vector<8x128xf32>
    %169 = math.exp %168 : vector<8x128xf32>
    %cst_48 = arith.constant 1.000000e+00 : f32
    %170 = vector.broadcast %cst_48 : f32 to vector<8x128xf32>
    %171 = arith.addf %170, %169 : vector<8x128xf32>
    %172 = arith.divf %170, %171 : vector<8x128xf32>
    %173 = math.tanh %167 : vector<8x128xf32>
    %174 = vector.extract_strided_slice %172 {offsets = [0, 0], sizes = [8, 32], strides = [1, 1]} : vector<8x128xf32> to vector<8x32xf32>
    %175 = vector.extract_strided_slice %172 {offsets = [0, 32], sizes = [8, 32], strides = [1, 1]} : vector<8x128xf32> to vector<8x32xf32>
    %176 = vector.extract_strided_slice %173 {offsets = [0, 64], sizes = [8, 32], strides = [1, 1]} : vector<8x128xf32> to vector<8x32xf32>
    %177 = vector.extract_strided_slice %172 {offsets = [0, 96], sizes = [8, 32], strides = [1, 1]} : vector<8x128xf32> to vector<8x32xf32>
    %178 = arith.mulf %175, %159 : vector<8x32xf32>
    %179 = arith.mulf %174, %176 : vector<8x32xf32>
    %180 = arith.addf %178, %179 : vector<8x32xf32>
    %181 = math.tanh %180 : vector<8x32xf32>
    %182 = arith.mulf %177, %181 : vector<8x32xf32>
    %c8_i32 = arith.constant 8 : i32
    %c0_49 = arith.constant 0 : index
    %c0_50 = arith.constant 0 : index
    %183 = vector.load %arg10[%c0_49, %c0_50] : memref<8x32xf32, #tpu.memory_space<vmem>>, vector<8x32xf32>
    tpu.vector_store %arg10[%c0_49, %c0_50], %182 {strides = array<i32>} : memref<8x32xf32, #tpu.memory_space<vmem>>, vector<8x32xf32>,
    %c0_51 = arith.constant 0 : index
    %c0_52 = arith.constant 0 : index
    %184 = vector.load %arg11[%c0_51, %c0_52] : memref<8x32xf32, #tpu.memory_space<vmem>>, vector<8x32xf32>
    tpu.vector_store %arg11[%c0_51, %c0_52], %180 {strides = array<i32>} : memref<8x32xf32, #tpu.memory_space<vmem>>, vector<8x32xf32>,
    %c0_i32_53 = arith.constant 0 : i32
    %185 = arith.cmpi eq, %arg1, %c0_i32_53 : i32
    %186 = arith.extui %185 : i1 to i32
    %c0_i32_54 = arith.constant 0 : i32
    %187 = arith.cmpi ne, %186, %c0_i32_54 : i32
    scf.if %187 {
      %c0_55 = arith.constant 0 : index
      %c0_56 = arith.constant 0 : index
      %188 = vector.load %arg6[%c0_55, %c0_56] : memref<1x32xf32, #tpu.memory_space<vmem>>, vector<1x32xf32>
      %189 = vector.broadcast %188 : vector<1x32xf32> to vector<8x32xf32>
      %190 = arith.mulf %182, %189 : vector<8x32xf32>
      %cst_57 = arith.constant dense<0.000000e+00> : vector<8xf32>
      %191 = vector.multi_reduction <add>, %190, %cst_57 [1] : vector<8x32xf32> to vector<8xf32>
      %192 = vector.shape_cast %191 : vector<8xf32> to vector<8x1xf32>
      %c0_58 = arith.constant 0 : index
      %193 = memref.load %arg7[%c0_58] : memref<1xf32, #tpu.memory_space<smem>>
      %194 = vector.broadcast %193 : f32 to vector<8x1xf32>
      %195 = arith.addf %192, %194 : vector<8x1xf32>
      %c0_59 = arith.constant 0 : index
      %c0_60 = arith.constant 0 : index
      %196 = vector.load %arg8[%c0_59, %c0_60] : memref<8x1xf32, #tpu.memory_space<vmem>>, vector<8x1xf32>
      tpu.vector_store %arg8[%c0_59, %c0_60], %195 {strides = array<i32>} : memref<8x1xf32, #tpu.memory_space<vmem>>, vector<8x1xf32>,
    } else {
    }
    return
  }
  func.func @transform_0(%arg0: i32, %arg1: i32) -> (i32, i32, i32) {
    %c0_i32 = arith.constant 0 : i32
    %c0_i32_0 = arith.constant 0 : i32
    return %arg1, %arg0, %c0_i32 : i32, i32, i32
  }
  func.func @transform_1(%arg0: i32, %arg1: i32) -> (i32, i32) {
    %c0_i32 = arith.constant 0 : i32
    %c0_i32_0 = arith.constant 0 : i32
    %c0_i32_1 = arith.constant 0 : i32
    return %c0_i32, %c0_i32_0 : i32, i32
  }
  func.func @transform_2(%arg0: i32, %arg1: i32) -> (i32, i32) {
    %c0_i32 = arith.constant 0 : i32
    %c0_i32_0 = arith.constant 0 : i32
    %c0_i32_1 = arith.constant 0 : i32
    return %c0_i32, %c0_i32_0 : i32, i32
  }
  func.func @transform_3(%arg0: i32, %arg1: i32) -> (i32, i32) {
    %c0_i32 = arith.constant 0 : i32
    %c0_i32_0 = arith.constant 0 : i32
    %c0_i32_1 = arith.constant 0 : i32
    return %c0_i32, %c0_i32_0 : i32, i32
  }
  func.func @transform_4(%arg0: i32, %arg1: i32) -> (i32, i32) {
    %c0_i32 = arith.constant 0 : i32
    %c0_i32_0 = arith.constant 0 : i32
    %c0_i32_1 = arith.constant 0 : i32
    return %c0_i32, %c0_i32_0 : i32, i32
  }
  func.func @transform_5(%arg0: i32, %arg1: i32) -> i32 {
    %c0_i32 = arith.constant 0 : i32
    %c0_i32_0 = arith.constant 0 : i32
    return %c0_i32 : i32
  }
  func.func @transform_6(%arg0: i32, %arg1: i32) -> (i32, i32) {
    %c0_i32 = arith.constant 0 : i32
    %c0_i32_0 = arith.constant 0 : i32
    return %arg0, %c0_i32 : i32, i32
  }
}

</mosaic_0001>

<bundles_post_ra>
// kernel: tpu_custom_call.1
= control target key start
LH: loop header
LB: loop body
LE: loop exit
PB: predicated region body
PF: predicated region fallthrough
CT: control target
= control target key end

     0   :  { %12 = vsyncpa [#allocation7], 0  ;;  %s1357_s0 = inlined_call_operand.hbm [shape: f32[8,8,8], index: 0, kind: input, shape index: {}]   ;;  %s1358_s1 = inlined_call_operand.hbm [shape: f32[8,128], index: 1, kind: input, shape index: {}]   ;;  %s1359_s2 = inlined_call_operand.vmem [shape: f32[1,128], index: 2, kind: input, shape index: {}]   ;;  %s1360_s3 = inlined_call_operand.hbm [shape: bf16[32,128], index: 3, kind: input, shape index: {}]   ;;  %s1361_s4 = inlined_call_operand.vmem [shape: f32[1,32], index: 4, kind: input, shape index: {}]   ;;  %s1362_s5 = inlined_call_operand.<no memory space> [shape: f32[1], index: 5, kind: input, shape index: {}]   ;;  %s1363_s6 = inlined_call_operand.vmem [shape: f32[8,1], index: 6, kind: output, shape index: {}]  }
   0x1   :  { %13 = vsyncpa [#allocation9], 0  ;;  %s1157_s21 = smov [#allocation8]   ;;  %s1158_s23 = smov [#allocation6]  }
   0x2   :  { %s32_s22 = sshll.u32 %s1157_s21, 4  ;;  %s19_s24 = sshll.u32 %s1158_s23, 4  ;;  %s33_s22 = int_to_ptr.vmem [resolvable:$true] %s32_s22  ;;  %s20_s24 = int_to_ptr.vmem [resolvable:$true] %s19_s24 }
   0x3   :  { %s1101_s25 = scalar_lea.vmem %s33_s22, 128  ;;  %p1106_p1 = scmp.lt.s32.totalorder %s33_s22, %s33_s22 }
   0x4   :  { %p1102_p0 = scmp.ne.s32.totalorder %s33_s22, %s1101_s25  ;;  %p1107_p2 = scmp.lt.s32.totalorder %s1101_s25, %s1101_s25 }
   0x6   :  { %p1108_p3 = por %p1107_p2, %p1106_p1 }
   0x8   :  { %p1109_p4 = pnand %p1108_p3, %p1102_p0 }
   0xa   :  { %1112 = shalt.err (!%p1109_p4)
}
   0xb   :  { %35 = dma.hbm_to_vmem [thread:$0]  %s1358_s1, 128, %s33_s22, [#allocation9]  }
   0xc   :  { %s1121_s28 = scalar_lea.vmem %s20_s24, 1024  ;;  %p1126_p6 = scmp.lt.s32.totalorder %s20_s24, %s20_s24 }
   0xd   :  { %p1122_p5 = scmp.ne.s32.totalorder %s20_s24, %s1121_s28  ;;  %p1127_p7 = scmp.lt.s32.totalorder %s1121_s28, %s1121_s28 }
   0xf   :  { %p1128_p8 = por %p1127_p7, %p1126_p6 }
  0x11   :  { %p1129_p9 = pnand %p1128_p8, %p1122_p5 }
  0x13   :  { %1132 = shalt.err (!%p1129_p9)
}
  0x14   :  { %s1159_s29 = smov 128   ;;  %s1160_s30 = smov 8  }
  0x15   :  { %25 = dma.hbm_to_vmem [thread:$0]  %s1357_s0, 1024, %s20_s24, [#allocation7], %s1159_s29, %s1159_s29, %s1160_s30  }
  0x16   :  { %s1161_s9 = smov [#allocation10]  }
  0x17   :  { %s43_s10 = sshll.u32 %s1161_s9, 4  ;;  %s44_s10 = int_to_ptr.vmem [resolvable:$true] %s43_s10 }
  0x18   :  { %s1141_s11 = scalar_lea.vmem %s44_s10, 256  ;;  %p1146_p11 = scmp.lt.s32.totalorder %s44_s10, %s44_s10 }
  0x19   :  { %p1142_p10 = scmp.ne.s32.totalorder %s44_s10, %s1141_s11  ;;  %p1147_p12 = scmp.lt.s32.totalorder %s1141_s11, %s1141_s11 }
  0x1b   :  { %p1148_p13 = por %p1147_p12, %p1146_p11 }
  0x1d   :  { %p1149_p0 = pnand %p1148_p13, %p1142_p10 }
  0x1f   :  { %1152 = shalt.err (!%p1149_p0)
}
  0x20   :  { %s1162_s1 = smov 64   ;;  %s1163_s12 = smov 4  }
  0x21   :  { %49 = dma.hbm_to_vmem [thread:$0]  %s1360_s3, 256, %s44_s10, [#allocation9], %s1162_s1, %s1162_s1, %s1163_s12  }
  0x22   :  { %1153 = dma.done.wait [#allocation7], 1024  }
  0x23   :  { %1154 = vsyncadd [#allocation7], 4294966272 }
  0x24   :  { %1155 = dma.done.wait [#allocation9], 384  }
  0x25   :  { %1156 = vsyncadd [#allocation9], 4294966912  ;;  %vm222_vm0 = vcmask 261120   ;;  %v1164_v0 = vmov 0.0   ;;  %vm1165_vm1 = vmmov 0   ;;  %vm80_vm2 = vcmask 64512  }
  0x26   :  { %952 = vmatprep.subr.bf16.mxu1 %v1164_v0  ;;  %956 = vmatprep.mubr.msk.bf16.mxu1 %vm1165_vm1, %v1164_v0  ;;  %223 = vst.msk [vmem:[#allocation3] sm:$0xff] %vm222_vm0, %v1164_v0  ;;  %224 = vst.msk [vmem:[#allocation4] sm:$0xff] %vm222_vm0, %v1164_v0  ;;  %v72_v1 = vld [vmem:[#allocation8] sm:$0xff]  ;;  %v1222_v3 = vld [vmem:[#allocation10 + $0x8] sm:$0xff]   ;;  %s1166_s15 = smov 32   ;;  %s1167_s17 = smov 96  }
  0x27   :  { %v64_v2 = vld [vmem:[#allocation6] sm:$0xff]  ;;  %938 = vmatprep.subr.mxu0 %v72_v1  ;;  %v65_v4 = vld [vmem:[#allocation6 + $0x8] sm:$0xff]  ;;  %953 = vmatpush3.bf16.msra.mxu1 %v1222_v3  ;;  %v1246_v9 = vld [vmem:[%s1359_s2] ss:$0 sm:$0xff]  ;;  %vm869_vm3 = vcmask 7168  }
  0x28   :  { %940 = vmatprep.mubr.msk.f32.mxu0 %vm80_vm2, %v64_v2  ;;  %939 = vmatpush3.msra.mxu0 %v72_v1  ;;  %v1226_v5 = vld [vmem:[#allocation10] sm:$0xff]   ;;  %v66_v50 = vld [vmem:[#allocation6 + $0x10] sm:$0xff]  ;;  %v67_v51 = vld [vmem:[#allocation6 + $0x18] sm:$0xff] }
  0x29   :  { %941 = vmatmul.mubr.msk.f32.vlgmr.msra.gmra.mxu0 %vm80_vm2, %v65_v4  ;;  %954 = vmatprep.subr.bf16.mxu1 %v1164_v0  ;;  %v68_v52 = vld [vmem:[#allocation6 + $0x20] sm:$0xff]  ;;  %v69_v53 = vld [vmem:[#allocation6 + $0x28] sm:$0xff]  ;;  %v70_v54 = vld [vmem:[#allocation6 + $0x30] sm:$0xff] }
  0x2a   :  { %968 = vmatprep.subr.bf16.mxu0 %v1164_v0  ;;  %943 = vmatprep.mubr.msk.f32.mxu0 %vm80_vm2, %v66_v50  ;;  %v71_v55 = vld [vmem:[#allocation6 + $0x38] sm:$0xff] }
  0x2b   :  { %969 = vmatpush3.bf16.msra.mxu0 %v1222_v3  ;;  %955 = vmatpush3.bf16.msra.mxu1 %v1226_v5 }
  0x2c   :  { %970 = vmatprep.subr.bf16.mxu0 %v1164_v0  ;;  %960 = vmatprep.subr.bf16.mxu1 %v1164_v0 }
  0x2d   :  { %v229_v6 = vld [vmem:[#allocation3] sm:$0xff]  ;;  %v230_v18 = vld [vmem:[#allocation4] sm:$0xff]  ;;  %944 = vmatmul.mubr.msk.f32.gmra.mxu0 %vm80_vm2, %v67_v51 }
  0x2e   :  { %v232_v7 = vpack.c.bf16 %v229_v6, %v229_v6  ;;  %946 = vmatprep.mubr.msk.f32.mxu0 %vm80_vm2, %v68_v52 }
  0x2f   :  { %971 = vmatpush3.bf16.msra.mxu0 %v1226_v5 }
  0x30   :  { %957 = vmatmul.mubr.msk.bf16.vlgmr.msra.gmra.mxu1 %vm222_vm0, %v232_v7  ;;  %984 = vmatprep.subr.bf16.mxu0 %v1164_v0 }
  0x31   :  { %961 = vmatpush3.bf16.msra.mxu1 %v1222_v3  ;;  %964 = vmatprep.mubr.msk.bf16.mxu1 %vm1165_vm1, %v1164_v0 }
  0x32   :  { %962 = vmatprep.subr.bf16.mxu1 %v1164_v0  ;;  %947 = vmatmul.mubr.msk.f32.gmra.mxu0 %vm80_vm2, %v69_v53 }
  0x33   :  { %949 = vmatprep.mubr.msk.f32.mxu0 %vm80_vm2, %v70_v54 }
  0x35   :  { %963 = vmatpush3.bf16.msra.mxu1 %v1226_v5 }
  0x36   :  { %976 = vmatprep.subr.bf16.mxu1 %v1164_v0  ;;  %950 = vmatmul.mubr.msk.f32.gmra.mxu0 %vm80_vm2, %v71_v55 }
  0x37   :  { %972 = vmatprep.mubr.msk.bf16.mxu0 %vm1165_vm1, %v1164_v0 }
  0xe9   :  { %v942_v8 = vpop.f32.mrf.mxu0 }
  0xea   :  { %v177_v34 = vadd.f32 %v942_v8, %v1246_v9 }
  0xeb   :  { %v171_v10 = vpop.f32.mrf.mxu0 }
  0xec   :  { %v172_v11 = vadd.f32 %v1246_v9, %v171_v10 }
  0xed   :  { %v945_v61 = vpop.f32.mrf.mxu0 }
  0xef   :  { %v181_v62 = vpop.f32.mrf.mxu0 }
  0xf0   :  { %v283_v12 = vpop.f32.mrf.mxu1  ;;  %v182_v6 = vadd.f32 %v1246_v9, %v181_v62 }
  0xf1   :  { %v289_v13 = vadd.f32 %v283_v12, %v172_v11 }
  0xf2   :  { %v958_v14 = vpop.f32.mrf.mxu1  ;;  %v1281_v63 = vpop.f32.mrf.mxu0 }
  0xf3   :  { %1029 = vtanh.f32 %v289_v13  ;;  %v889_v19 = vmul.f32 -1.442695, %v289_v13 }
  0xf4   :  { %v286_v15 = vpop.f32.mrf.mxu1  ;;  %v1283_v1 = vpop.f32.mrf.mxu0 }
  0xf5   :  { %1031 = vpow2.f32 %v889_v19 }
  0xf6   :  { %v959_v16 = vpop.f32.mrf.mxu1  ;;  %v1285_v2 = vpop.f32.mrf.mxu0 }
  0xf8   :  { %v1287_v4 = vpop.f32.mrf.mxu0 }
 0x100   :  { %v1030_v17 = vpop.eup %1029 }
 0x101   :  { %303 = vrot.lane.b32.xlu0 %v1030_v17, %s1162_s1 }
 0x102   :  { %v1032_v20 = vpop.eup %1031 }
 0x103   :  { %v293_v21 = vadd.f32 1.0, %v1032_v20 }
 0x105   :  { %298 = vrot.lane.b32.xlu0 %v230_v18, %s1166_s15  ;;  %1033 = vrcp.f32 %v293_v21 }
 0x112   :  { %v1034_v22 = vpop.eup %1033 }
 0x173   :  { %v304_v23 = vpop.permute.xlu0 %303 }
 0x174   :  { %v306_v24 = vmul.f32 %v1034_v22, %v304_v23 }
 0x176   :  { %308 = vrot.lane.b32.xlu1 %v306_v24, %s1166_s15 }
 0x177   :  { %v299_v25 = vpop.permute.xlu0 %298 }
 0x178   :  { %v301_v26 = vmul.f32 %v1034_v22, %v299_v25 }
 0x1e8   :  { %v309_v27 = vpop.permute.xlu1 %308 }
 0x1e9   :  { %v311_v28 = vadd.f32 %v309_v27, %v301_v26 }
 0x1eb   :  { %1035 = vtanh.f32 %v311_v28 }
 0x1f8   :  { %v1036_v29 = vpop.eup %1035 }
 0x1f9   :  { %314 = vrot.lane.b32.xlu1 %v1036_v29, %s1162_s1 }
 0x26b   :  { %v315_v30 = vpop.permute.xlu1 %314 }
 0x26c   :  { %v317_v31 = vmul.f32 %v1034_v22, %v315_v30 }
 0x26e   :  { %v320_v32 = vpack.c.bf16 %v317_v31, %v317_v31 }
 0x270   :  { %322 = vrot.lane.b32.xlu0 %v320_v32, %s1166_s15 }
 0x2e2   :  { %v323_v33 = vpop.permute.xlu0 %322 }
 0x2e3   :  { %965 = vmatmul.mubr.msk.bf16.vlgmr.msra.gmra.mxu1 %vm222_vm0, %v323_v33 }
 0x2e4   :  { %977 = vmatpush3.bf16.msra.mxu1 %v1222_v3  ;;  %980 = vmatprep.mubr.msk.bf16.mxu1 %vm1165_vm1, %v1164_v0 }
 0x2e5   :  { %978 = vmatprep.subr.bf16.mxu1 %v1164_v0 }
 0x2e8   :  { %979 = vmatpush3.bf16.msra.mxu1 %v1226_v5 }
 0x2e9   :  { %992 = vmatprep.subr.bf16.mxu1 %v1164_v0 }
 0x3a3   :  { %v361_v35 = vpop.f32.mrf.mxu1 }
 0x3a4   :  { %v367_v36 = vadd.f32 %v361_v35, %v177_v34 }
 0x3a5   :  { %v966_v37 = vpop.f32.mrf.mxu1 }
 0x3a6   :  { %1037 = vtanh.f32 %v367_v36  ;;  %v891_v41 = vmul.f32 -1.442695, %v367_v36 }
 0x3a7   :  { %v364_v38 = vpop.f32.mrf.mxu1 }
 0x3a8   :  { %1039 = vpow2.f32 %v891_v41 }
 0x3a9   :  { %v967_v39 = vpop.f32.mrf.mxu1 }
 0x3b3   :  { %v1038_v40 = vpop.eup %1037 }
 0x3b4   :  { %377 = vrot.lane.b32.xlu1 %v1038_v40, %s1162_s1 }
 0x3b5   :  { %v1040_v42 = vpop.eup %1039 }
 0x3b6   :  { %v371_v43 = vadd.f32 1.0, %v1040_v42 }
 0x3b8   :  { %1041 = vrcp.f32 %v371_v43 }
 0x3c5   :  { %v1042_v44 = vpop.eup %1041 }
 0x3c6   :  { %v375_v47 = vmul.f32 %v1042_v44, %v311_v28  ;;  %v187_v28 = vadd.f32 %v945_v61, %v1246_v9 }
 0x426   :  { %v378_v45 = vpop.permute.xlu1 %377 }
 0x427   :  { %v380_v46 = vmul.f32 %v1042_v44, %v378_v45 }
 0x429   :  { %382 = vrot.lane.b32.xlu0 %v380_v46, %s1166_s15 }
 0x49b   :  { %v383_v48 = vpop.permute.xlu0 %382 }
 0x49c   :  { %v385_v49 = vadd.f32 %v383_v48, %v375_v47 }
 0x49e   :  { %1043 = vtanh.f32 %v385_v49 }
 0x4ab   :  { %v1044_v56 = vpop.eup %1043 }
 0x4ac   :  { %388 = vrot.lane.b32.xlu1 %v1044_v56, %s1162_s1 }
 0x51e   :  { %v389_v57 = vpop.permute.xlu1 %388 }
 0x51f   :  { %v391_v58 = vmul.f32 %v1042_v44, %v389_v57 }
 0x521   :  { %v394_v59 = vpack.c.bf16 %v391_v58, %v391_v58 }
 0x523   :  { %396 = vrot.lane.b32.xlu0 %v394_v59, %s1166_s15 }
 0x595   :  { %v397_v60 = vpop.permute.xlu0 %396 }
 0x596   :  { %973 = vmatmul.mubr.msk.bf16.vlgmr.msra.gmra.mxu0 %vm222_vm0, %v397_v60 }
 0x597   :  { %985 = vmatpush3.bf16.msra.mxu0 %v1222_v3  ;;  %988 = vmatprep.mubr.msk.bf16.mxu0 %vm1165_vm1, %v1164_v0 }
 0x598   :  { %986 = vmatprep.subr.bf16.mxu0 %v1164_v0 }
 0x59b   :  { %987 = vmatpush3.bf16.msra.mxu0 %v1226_v5 }
 0x59c   :  { %1000 = vmatprep.subr.bf16.mxu0 %v1164_v0 }
 0x656   :  { %v435_v7 = vpop.f32.mrf.mxu0 }
 0x657   :  { %v441_v8 = vadd.f32 %v435_v7, %v182_v6 }
 0x658   :  { %v974_v10 = vpop.f32.mrf.mxu0 }
 0x659   :  { %1045 = vtanh.f32 %v441_v8  ;;  %v893_v14 = vmul.f32 -1.442695, %v441_v8 }
 0x65a   :  { %v438_v11 = vpop.f32.mrf.mxu0 }
 0x65b   :  { %1047 = vpow2.f32 %v893_v14 }
 0x65c   :  { %v975_v12 = vpop.f32.mrf.mxu0 }
 0x666   :  { %v1046_v13 = vpop.eup %1045 }
 0x667   :  { %451 = vrot.lane.b32.xlu1 %v1046_v13, %s1162_s1  ;;  %v197_v13 = vadd.f32 %v1281_v63, %v1246_v9 }
 0x668   :  { %v1048_v15 = vpop.eup %1047 }
 0x669   :  { %v445_v16 = vadd.f32 1.0, %v1048_v15 }
 0x66b   :  { %1049 = vrcp.f32 %v445_v16 }
 0x678   :  { %v1050_v17 = vpop.eup %1049 }
 0x679   :  { %v449_v20 = vmul.f32 %v1050_v17, %v385_v49  ;;  %v192_v49 = vadd.f32 %v1246_v9, %v1283_v1 }
 0x6d9   :  { %v452_v18 = vpop.permute.xlu1 %451 }
 0x6da   :  { %v454_v19 = vmul.f32 %v1050_v17, %v452_v18 }
 0x6dc   :  { %456 = vrot.lane.b32.xlu0 %v454_v19, %s1166_s15 }
 0x74e   :  { %v457_v21 = vpop.permute.xlu0 %456 }
 0x74f   :  { %v459_v22 = vadd.f32 %v457_v21, %v449_v20 }
 0x751   :  { %1051 = vtanh.f32 %v459_v22 }
 0x75e   :  { %v1052_v23 = vpop.eup %1051 }
 0x75f   :  { %462 = vrot.lane.b32.xlu1 %v1052_v23, %s1162_s1 }
 0x7d1   :  { %v463_v24 = vpop.permute.xlu1 %462 }
 0x7d2   :  { %v465_v25 = vmul.f32 %v1050_v17, %v463_v24 }
 0x7d4   :  { %v468_v26 = vpack.c.bf16 %v465_v25, %v465_v25 }
 0x7d6   :  { %470 = vrot.lane.b32.xlu0 %v468_v26, %s1166_s15 }
 0x848   :  { %v471_v27 = vpop.permute.xlu0 %470 }
 0x849   :  { %981 = vmatmul.mubr.msk.bf16.vlgmr.msra.gmra.mxu1 %vm222_vm0, %v471_v27 }
 0x84a   :  { %993 = vmatpush3.bf16.msra.mxu1 %v1222_v3  ;;  %996 = vmatprep.mubr.msk.bf16.mxu1 %vm1165_vm1, %v1164_v0 }
 0x84b   :  { %994 = vmatprep.subr.bf16.mxu1 %v1164_v0 }
 0x84e   :  { %995 = vmatpush3.bf16.msra.mxu1 %v1226_v5 }
 0x84f   :  { %1008 = vmatprep.subr.bf16.mxu1 %v1164_v0 }
 0x909   :  { %v509_v29 = vpop.f32.mrf.mxu1 }
 0x90a   :  { %v515_v30 = vadd.f32 %v509_v29, %v187_v28 }
 0x90b   :  { %v982_v31 = vpop.f32.mrf.mxu1 }
 0x90c   :  { %1053 = vtanh.f32 %v515_v30  ;;  %v895_v35 = vmul.f32 -1.442695, %v515_v30  ;;  %v202_v30 = vadd.f32 %v1246_v9, %v1287_v4 }
 0x90d   :  { %v512_v32 = vpop.f32.mrf.mxu1 }
 0x90e   :  { %1055 = vpow2.f32 %v895_v35 }
 0x90f   :  { %v983_v33 = vpop.f32.mrf.mxu1 }
 0x919   :  { %v1054_v34 = vpop.eup %1053 }
 0x91a   :  { %525 = vrot.lane.b32.xlu1 %v1054_v34, %s1162_s1 }
 0x91b   :  { %v1056_v36 = vpop.eup %1055 }
 0x91c   :  { %v519_v37 = vadd.f32 1.0, %v1056_v36 }
 0x91e   :  { %1057 = vrcp.f32 %v519_v37 }
 0x92b   :  { %v1058_v38 = vpop.eup %1057 }
 0x92c   :  { %v523_v41 = vmul.f32 %v1058_v38, %v459_v22 }
 0x98c   :  { %v526_v39 = vpop.permute.xlu1 %525 }
 0x98d   :  { %v528_v40 = vmul.f32 %v1058_v38, %v526_v39 }
 0x98f   :  { %530 = vrot.lane.b32.xlu0 %v528_v40, %s1166_s15 }
 0xa01   :  { %v531_v42 = vpop.permute.xlu0 %530 }
 0xa02   :  { %v533_v43 = vadd.f32 %v531_v42, %v523_v41 }
 0xa04   :  { %1059 = vtanh.f32 %v533_v43 }
 0xa11   :  { %v1060_v44 = vpop.eup %1059 }
 0xa12   :  { %536 = vrot.lane.b32.xlu1 %v1060_v44, %s1162_s1 }
 0xa84   :  { %v537_v45 = vpop.permute.xlu1 %536 }
 0xa85   :  { %v539_v46 = vmul.f32 %v1058_v38, %v537_v45 }
 0xa87   :  { %v542_v47 = vpack.c.bf16 %v539_v46, %v539_v46 }
 0xa89   :  { %544 = vrot.lane.b32.xlu0 %v542_v47, %s1166_s15 }
 0xafb   :  { %v545_v48 = vpop.permute.xlu0 %544 }
 0xafc   :  { %989 = vmatmul.mubr.msk.bf16.vlgmr.msra.gmra.mxu0 %vm222_vm0, %v545_v48 }
 0xafd   :  { %1001 = vmatpush3.bf16.msra.mxu0 %v1222_v3  ;;  %1004 = vmatprep.mubr.msk.bf16.mxu0 %vm1165_vm1, %v1164_v0 }
 0xafe   :  { %1002 = vmatprep.subr.bf16.mxu0 %v1164_v0 }
 0xb01   :  { %1003 = vmatpush3.bf16.msra.mxu0 %v1226_v5 }
 0xbbc   :  { %v583_v50 = vpop.f32.mrf.mxu0 }
 0xbbd   :  { %v589_v51 = vadd.f32 %v583_v50, %v192_v49  ;;  %v207_v50 = vadd.f32 %v1285_v2, %v1246_v9  ;;  %v904_v9 = vld [vmem:[%s1361_s4] ss:$0 sm:$0xff] }
 0xbbe   :  { %v990_v52 = vpop.f32.mrf.mxu0 }
 0xbbf   :  { %1061 = vtanh.f32 %v589_v51  ;;  %v897_v56 = vmul.f32 -1.442695, %v589_v51 }
 0xbc0   :  { %v586_v53 = vpop.f32.mrf.mxu0 }
 0xbc1   :  { %1063 = vpow2.f32 %v897_v56 }
 0xbc2   :  { %v991_v54 = vpop.f32.mrf.mxu0 }
 0xbcc   :  { %v1062_v55 = vpop.eup %1061 }
 0xbcd   :  { %599 = vrot.lane.b32.xlu1 %v1062_v55, %s1162_s1 }
 0xbce   :  { %v1064_v57 = vpop.eup %1063 }
 0xbcf   :  { %v593_v58 = vadd.f32 1.0, %v1064_v57 }
 0xbd1   :  { %1065 = vrcp.f32 %v593_v58 }
 0xbde   :  { %v1066_v59 = vpop.eup %1065 }
 0xbdf   :  { %v597_v62 = vmul.f32 %v1066_v59, %v533_v43 }
 0xc3f   :  { %v600_v60 = vpop.permute.xlu1 %599 }
 0xc40   :  { %v602_v61 = vmul.f32 %v1066_v59, %v600_v60 }
 0xc42   :  { %604 = vrot.lane.b32.xlu0 %v602_v61, %s1166_s15 }
 0xcb4   :  { %v605_v1 = vpop.permute.xlu0 %604 }
 0xcb5   :  { %v607_v6 = vadd.f32 %v605_v1, %v597_v62 }
 0xcb7   :  { %1067 = vtanh.f32 %v607_v6 }
 0xcc4   :  { %v1068_v7 = vpop.eup %1067 }
 0xcc5   :  { %610 = vrot.lane.b32.xlu1 %v1068_v7, %s1162_s1 }
 0xd37   :  { %v611_v8 = vpop.permute.xlu1 %610 }
 0xd38   :  { %v613_v10 = vmul.f32 %v1066_v59, %v611_v8 }
 0xd3a   :  { %v616_v11 = vpack.c.bf16 %v613_v10, %v613_v10 }
 0xd3c   :  { %618 = vrot.lane.b32.xlu0 %v616_v11, %s1166_s15 }
 0xdae   :  { %v619_v12 = vpop.permute.xlu0 %618 }
 0xdaf   :  { %997 = vmatmul.mubr.msk.bf16.vlgmr.msra.gmra.mxu1 %vm222_vm0, %v619_v12 }
 0xdb0   :  { %1009 = vmatpush3.bf16.msra.mxu1 %v1222_v3  ;;  %1012 = vmatprep.mubr.msk.bf16.mxu1 %vm1165_vm1, %v1164_v0 }
 0xdb1   :  { %1010 = vmatprep.subr.bf16.mxu1 %v1164_v0 }
 0xdb4   :  { %1011 = vmatpush3.bf16.msra.mxu1 %v1226_v5 }
 0xe6f   :  { %v657_v14 = vpop.f32.mrf.mxu1 }
 0xe70   :  { %v663_v15 = vadd.f32 %v657_v14, %v197_v13 }
 0xe71   :  { %v998_v16 = vpop.f32.mrf.mxu1 }
 0xe72   :  { %1069 = vtanh.f32 %v663_v15  ;;  %v899_v3 = vmul.f32 -1.442695, %v663_v15 }
 0xe73   :  { %v660_v17 = vpop.f32.mrf.mxu1 }
 0xe74   :  { %1071 = vpow2.f32 %v899_v3  ;;  %v867_v17 = vstv %s1362_s5 }
 0xe75   :  { %v999_v18 = vpop.f32.mrf.mxu1 }
 0xe7f   :  { %v1070_v19 = vpop.eup %1069 }
 0xe80   :  { %673 = vrot.lane.b32.xlu1 %v1070_v19, %s1162_s1 }
 0xe81   :  { %v1072_v20 = vpop.eup %1071 }
 0xe82   :  { %v667_v21 = vadd.f32 1.0, %v1072_v20 }
 0xe84   :  { %1073 = vrcp.f32 %v667_v21 }
 0xe91   :  { %v1074_v0 = vpop.eup %1073 }
 0xe92   :  { %v671_v63 = vmul.f32 %v1074_v0, %v607_v6 }
 0xef2   :  { %v674_v22 = vpop.permute.xlu1 %673 }
 0xef3   :  { %v676_v5 = vmul.f32 %v1074_v0, %v674_v22 }
 0xef5   :  { %678 = vrot.lane.b32.xlu0 %v676_v5, %s1166_s15 }
 0xf67   :  { %v679_v23 = vpop.permute.xlu0 %678 }
 0xf68   :  { %v681_v24 = vadd.f32 %v679_v23, %v671_v63 }
 0xf6a   :  { %1075 = vtanh.f32 %v681_v24 }
 0xf77   :  { %v1076_v25 = vpop.eup %1075 }
 0xf78   :  { %684 = vrot.lane.b32.xlu1 %v1076_v25, %s1162_s1 }
 0xfea   :  { %v685_v26 = vpop.permute.xlu1 %684 }
 0xfeb   :  { %v687_v27 = vmul.f32 %v1074_v0, %v685_v26 }
 0xfed   :  { %v690_v28 = vpack.c.bf16 %v687_v27, %v687_v27 }
 0xfef   :  { %692 = vrot.lane.b32.xlu0 %v690_v28, %s1166_s15 }
0x1061   :  { %v693_v29 = vpop.permute.xlu0 %692 }
0x1062   :  { %1005 = vmatmul.mubr.msk.bf16.vlgmr.msra.gmra.mxu0 %vm222_vm0, %v693_v29 }
0x1122   :  { %v731_v31 = vpop.f32.mrf.mxu0 }
0x1123   :  { %v737_v32 = vadd.f32 %v731_v31, %v202_v30 }
0x1124   :  { %v1006_v33 = vpop.f32.mrf.mxu0 }
0x1125   :  { %1077 = vtanh.f32 %v737_v32  ;;  %v901_v37 = vmul.f32 -1.442695, %v737_v32 }
0x1126   :  { %v734_v34 = vpop.f32.mrf.mxu0 }
0x1127   :  { %1079 = vpow2.f32 %v901_v37 }
0x1128   :  { %v1007_v35 = vpop.f32.mrf.mxu0 }
0x1132   :  { %v1078_v36 = vpop.eup %1077 }
0x1133   :  { %747 = vrot.lane.b32.xlu1 %v1078_v36, %s1162_s1 }
0x1134   :  { %v1080_v38 = vpop.eup %1079 }
0x1135   :  { %v741_v39 = vadd.f32 1.0, %v1080_v38 }
0x1137   :  { %1081 = vrcp.f32 %v741_v39 }
0x1144   :  { %v1082_v40 = vpop.eup %1081 }
0x1145   :  { %v745_v4 = vmul.f32 %v1082_v40, %v681_v24 }
0x11a5   :  { %v748_v41 = vpop.permute.xlu1 %747 }
0x11a6   :  { %v750_v42 = vmul.f32 %v1082_v40, %v748_v41 }
0x11a8   :  { %752 = vrot.lane.b32.xlu0 %v750_v42, %s1166_s15 }
0x121a   :  { %v753_v43 = vpop.permute.xlu0 %752 }
0x121b   :  { %v755_v44 = vadd.f32 %v753_v43, %v745_v4 }
0x121d   :  { %1083 = vtanh.f32 %v755_v44 }
0x122a   :  { %v1084_v45 = vpop.eup %1083 }
0x122b   :  { %758 = vrot.lane.b32.xlu1 %v1084_v45, %s1162_s1 }
0x129d   :  { %v759_v46 = vpop.permute.xlu1 %758 }
0x129e   :  { %v761_v47 = vmul.f32 %v1082_v40, %v759_v46 }
0x12a0   :  { %v764_v48 = vpack.c.bf16 %v761_v47, %v761_v47 }
0x12a2   :  { %766 = vrot.lane.b32.xlu0 %v764_v48, %s1166_s15 }
0x1314   :  { %v767_v49 = vpop.permute.xlu0 %766 }
0x1315   :  { %1013 = vmatmul.mubr.msk.bf16.vlgmr.msra.gmra.mxu1 %vm222_vm0, %v767_v49 }
0x13d5   :  { %v805_v51 = vpop.f32.mrf.mxu1 }
0x13d6   :  { %v811_v52 = vadd.f32 %v805_v51, %v207_v50 }
0x13d7   :  { %v1014_v53 = vpop.f32.mrf.mxu1 }
0x13d8   :  { %1085 = vtanh.f32 %v811_v52  ;;  %v903_v57 = vmul.f32 -1.442695, %v811_v52 }
0x13d9   :  { %v808_v54 = vpop.f32.mrf.mxu1 }
0x13da   :  { %1087 = vpow2.f32 %v903_v57 }
0x13db   :  { %v1015_v55 = vpop.f32.mrf.mxu1 }
0x13e5   :  { %v1086_v56 = vpop.eup %1085 }
0x13e6   :  { %821 = vrot.lane.b32.xlu1 %v1086_v56, %s1162_s1 }
0x13e7   :  { %v1088_v58 = vpop.eup %1087 }
0x13e8   :  { %v815_v59 = vadd.f32 1.0, %v1088_v58 }
0x13ea   :  { %1089 = vrcp.f32 %v815_v59 }
0x13f7   :  { %v1090_v60 = vpop.eup %1089 }
0x13f8   :  { %v819_v2 = vmul.f32 %v1090_v60, %v755_v44 }
0x1458   :  { %v822_v61 = vpop.permute.xlu1 %821 }
0x1459   :  { %v824_v62 = vmul.f32 %v1090_v60, %v822_v61 }
0x145b   :  { %826 = vrot.lane.b32.xlu0 %v824_v62, %s1166_s15 }
0x145f   :  { %855 = vrot.lane.b32.xlu0 %v904_v9, %s1167_s17 }
0x14cd   :  { %v827_v1 = vpop.permute.xlu0 %826 }
0x14ce   :  { %v829_v6 = vadd.f32 %v827_v1, %v819_v2 }
0x14d0   :  { %1091 = vtanh.f32 %v829_v6 }
0x14d1   :  { %v856_v10 = vpop.permute.xlu0 %855 }
0x14dd   :  { %v1092_v7 = vpop.eup %1091 }
0x14de   :  { %832 = vrot.lane.b32.xlu1 %v1092_v7, %s1162_s1 }
0x1550   :  { %v833_v8 = vpop.permute.xlu1 %832 }
0x1551   :  { %v835_v11 = vmul.f32 %v1090_v60, %v833_v8 }
0x1553   :  { %v858_v12 = vmul.f32 %v856_v10, %v835_v11 }
0x1555   :  { %860 = vrot.lane.b32.xlu1 %v858_v12, %s1166_s15 }
0x1559   :  { %837 = vrot.lane.b32.xlu1 %v835_v11, %s1166_s15 }
0x155d   :  { %842 = vrot.lane.b32.xlu1 %v829_v6, %s1167_s17 }
0x15c7   :  { %v861_v13 = vpop.permute.xlu1 %860 }
0x15c8   :  { %v863_v14 = vsel %vm222_vm0, %v861_v13, 0.0 }
0x15c9   :  { %864 = vadd.xlane.f32.xlu0 %v863_v14 }
0x15cb   :  { %v838_v15 = vpop.permute.xlu1 %837 }
0x15cc   :  { %840 = vst.msk [vmem:[#allocation3] sm:$0xff] %vm222_vm0, %v838_v15 }
0x15cf   :  { %v843_v16 = vpop.permute.xlu1 %842 }
0x15d0   :  { %845 = vst.msk [vmem:[#allocation4] sm:$0xff] %vm222_vm0, %v843_v16 }
0x1652   :  { %v865_v18 = vpop.xlane.xlu0 %864 }
0x1653   :  { %v868_v19 = vadd.f32 %v867_v17, %v865_v18 }
0x1655   :  { %870 = vst.msk [vmem:[%s1363_s6] sm:$0xff] %vm869_vm3, %v868_v19 }
0x1656   :  { %875 = vsyncpa [#allocation7], 1 }
0x1657   :  { %876 = vsyncpa [#allocation9], 1 }

</bundles_post_ra>
